<compile_context>
chip_gen: v7x
topology: tpu7x:2x2x1
jax: 0.10.0
libtpu: 0.0.40
codegen_flags: <defaults>
</compile_context>

<pallas_src>
import functools

import jax
import jax.numpy as jnp
from jax.experimental import pallas as pl
from jax.experimental.pallas import tpu as pltpu

EPS = 1e-5  # nn.LayerNorm default
_MIB = 1024 * 1024


def _clamp_vmem(nbytes, lo=32 * _MIB, hi=64 * _MIB):
    # Explicit scoped-VMEM budget (defaults are 16/32 MiB depending on chip);
    # capped at 64 MiB so the same setting stays safe on v7x (64 MiB physical).
    return int(min(max(nbytes, lo), hi))


# ---------------------------------------------------------------------------
# small math helpers (used both inside the kernels and in the JAX reference)
# ---------------------------------------------------------------------------
def _layernorm(x, gamma, beta):
    x = x.astype(jnp.float32)
    mu = jnp.mean(x, axis=-1, keepdims=True)
    var = jnp.mean(jnp.square(x - mu), axis=-1, keepdims=True)
    return (x - mu) * jax.lax.rsqrt(var + EPS) * gamma + beta


def _gelu(x):
    # TODO(synk): PyTorch F.gelu default is the exact erf form; the tanh
    # approximation is used so the op lowers cleanly to the EUP.
    return 0.5 * x * (1.0 + jnp.tanh(0.7978845608028654 * (x + 0.044715 * x * x * x)))


# ---------------------------------------------------------------------------
# fused gMLP block stack: one pallas_call over grid = (batch tiles, layers)
# ---------------------------------------------------------------------------
# TODO(synk): multi_gMLPBLOCK_Extended internals are not given in the spec;
# implemented as the standard gMLP block (pre-LN -> channel proj -> GELU ->
# Spatial Gating Unit over seq_len -> channel proj -> residual), and the
# evaluate=True CSV routing path (file I/O) is omitted.
def _gmlp_stack_kernel(x_ref, ln1_g_ref, ln1_b_ref, w1_ref, b1_ref,
                       sgu_g_ref, sgu_b_ref, wsp_ref, bsp_ref, w2_ref, b2_ref,
                       o_ref, *, bt, seq_len, d_model, d_half):
    layer = pl.program_id(1)

    # Layer 0: pull this batch tile into the resident f32 output block; its
    # block index is constant across the layer axis so it stays in VMEM for
    # the whole layer loop (the residual stream never round-trips to HBM).
    @pl.when(layer == 0)
    def _():
        o_ref[...] = x_ref[...].astype(jnp.float32)

    rows = bt * seq_len
    x2 = o_ref[...].reshape(rows, d_model)                      # (Bt*S, D) f32

    # pre-norm over d_model (f32 statistics)
    h = _layernorm(x2, ln1_g_ref[0], ln1_b_ref[0])

    # channel_proj1 (d_model -> d_ffn) as ONE wide matmul, then GELU and a
    # lane-slice into the u / v halves (== gelu(x @ W1 + b1).chunk(2, -1)).
    z = jnp.dot(h.astype(jnp.bfloat16), w1_ref[0],
                preferred_element_type=jnp.float32) + b1_ref[0]  # (Bt*S, F)
    z = _gelu(z)
    u = z[:, :d_half].astype(jnp.bfloat16)                       # gate operand, bf16
    v = _layernorm(z[:, d_half:], sgu_g_ref[0], sgu_b_ref[0])    # (Bt*S, F/2) f32

    # Spatial Gating Unit: spatial projection over seq_len
    # (Conv1d(seq_len, seq_len, 1) == wsp @ v + bsp, bias broadcast over
    # channels).  One batched matmul with wsp broadcast across the batch-tile
    # dim -- no per-batch-element Python loop, no concatenate copy.
    v3 = v.reshape(bt, seq_len, d_half).astype(jnp.bfloat16)
    wsp_b = jnp.broadcast_to(wsp_ref[...], (bt, seq_len, seq_len))   # bf16
    v_sp = jnp.einsum("bst,btf->bsf", wsp_b, v3,
                      preferred_element_type=jnp.float32) + bsp_ref[0][None]

    gated = u.reshape(bt, seq_len, d_half) * v_sp                # (Bt, S, F/2) f32

    # channel_proj2 (d_ffn/2 -> d_model) + residual add in f32, accumulated
    # directly into the resident output block.
    out = jnp.dot(gated.reshape(rows, d_half).astype(jnp.bfloat16), w2_ref[0],
                  preferred_element_type=jnp.float32) + b2_ref[0]
    o_ref[...] = (x2 + out).reshape(bt, seq_len, d_model)


_STACKED_ORDER = ("ln1_g", "ln1_b", "w1", "b1", "sgu_g", "sgu_b",
                  "wsp", "bsp", "w2", "b2")


def _pick_batch_tile(batch, seq_len, target_rows=512, min_batch_steps=2):
    """Largest divisor of `batch` with bt*seq_len within the row budget while
    keeping >= min_batch_steps grid steps on the batch axis (so the
    'parallel' axis can shard across the two TensorCores on v7x)."""
    divisors = [d for d in range(1, batch + 1) if batch % d == 0]
    good = [d for d in divisors
            if d * seq_len <= target_rows and batch // d >= min_batch_steps]
    if good:
        return max(good)
    good = [d for d in divisors if d * seq_len <= target_rows]
    return max(good) if good else 1


def gmlp_stack_forward(x, params, *, batch_tile=None):
    """x: (B, S, D) activations; params: dict of (L, ...)-stacked weights."""
    B, S, D = x.shape
    L, _, F = params["w1"].shape
    half = F // 2
    bt = batch_tile if batch_tile is not None else _pick_batch_tile(B, S)
    assert B % bt == 0, "batch must be divisible by the batch tile"

    def weight_spec(arr):
        r = arr.ndim - 1
        return pl.BlockSpec((1,) + arr.shape[1:],
                            lambda b, l, _r=r: (l,) + (0,) * _r)

    in_specs = [pl.BlockSpec((bt, S, D), lambda b, l: (b, 0, 0))]
    in_specs += [weight_spec(params[k]) for k in _STACKED_ORDER]

    rows = bt * S
    vmem_est = (
        2 * 2 * (D * F + half * D + S * S)          # dbl-buffered bf16 matmul weights
        + 2 * 4 * (3 * D + F + 2 * half + S)        # LN params / biases (f32)
        + 4 * rows * D * 3                          # input block (2 bufs) + resident output
        + 4 * rows * (F + 3 * half)                 # z / v / v_sp / gated temporaries
    )

    kernel = functools.partial(_gmlp_stack_kernel, bt=bt, seq_len=S,
                               d_model=D, d_half=half)

    return pl.pallas_call(
        kernel,
        out_shape=jax.ShapeDtypeStruct((B, S, D), jnp.float32),
        grid=(B // bt, L),
        in_specs=in_specs,
        out_specs=pl.BlockSpec((bt, S, D), lambda b, l: (b, 0, 0)),
        compiler_params=pltpu.CompilerParams(
            dimension_semantics=("parallel", "arbitrary"),
            vmem_limit_bytes=_clamp_vmem(2 * vmem_est)),
    )(x, *(params[k] for k in _STACKED_ORDER))


# ---------------------------------------------------------------------------
# MaskedLanguageModelingHead: Linear(d_model, vocab) + LogSoftmax(dim=-1)
# ---------------------------------------------------------------------------
def _lm_head_fused_kernel(x_ref, w_ref, b_ref, o_ref, *, bt, seq_len, d_model):
    # Small-vocab path: full (D, V) tile fits VMEM, single pass.
    rows = bt * seq_len
    x = x_ref[...].reshape(rows, d_model).astype(jnp.bfloat16)
    logits = jnp.dot(x, w_ref[...], preferred_element_type=jnp.float32) + b_ref[...]
    s = logits - jnp.max(logits, axis=-1, keepdims=True)
    lse = jnp.log(jnp.sum(jnp.exp(s), axis=-1, keepdims=True))
    o_ref[...] = (s - lse).reshape(bt, seq_len, -1).astype(o_ref.dtype)


def _lm_logits_lse_kernel(x_ref, w_ref, b_ref, logits_ref, lse_ref, m_sc, l_sc,
                          *, bt, seq_len, d_model):
    # Vocab-tiled pass 1: logits per tile + running max / sum-exp across the
    # vocab grid axis; the (bt, S, 1) LSE output is resident (constant block
    # index across the vocab axis).
    vi = pl.program_id(1)

    @pl.when(vi == 0)
    def _():
        m_sc[...] = jnp.full(m_sc.shape, -jnp.inf, m_sc.dtype)
        l_sc[...] = jnp.zeros(l_sc.shape, l_sc.dtype)

    rows = bt * seq_len
    x = x_ref[...].reshape(rows, d_model).astype(jnp.bfloat16)
    logits = jnp.dot(x, w_ref[...], preferred_element_type=jnp.float32) + b_ref[...]
    logits_ref[...] = logits.reshape(bt, seq_len, -1)

    m_prev = m_sc[...]
    m_new = jnp.maximum(m_prev, jnp.max(logits, axis=-1, keepdims=True))
    l_sc[...] = (l_sc[...] * jnp.exp(m_prev - m_new)
                 + jnp.sum(jnp.exp(logits - m_new), axis=-1, keepdims=True))
    m_sc[...] = m_new

    @pl.when(vi == pl.num_programs(1) - 1)
    def _():
        lse_ref[...] = (m_sc[...] + jnp.log(l_sc[...])).reshape(bt, seq_len, 1)


def _lm_normalize_kernel(logits_ref, lse_ref, o_ref):
    # Vocab-tiled pass 2: lane-dense elementwise log-softmax normalization.
    o_ref[...] = (logits_ref[...] - lse_ref[...]).astype(o_ref.dtype)


def _pick_vocab_tile(vocab, max_tile=2048):
    if vocab <= max_tile:
        return vocab
    for t in range(max_tile, 127, -128):
        if vocab % t == 0:
            return t
    return vocab   # no 128-multiple divisor -> fall back to the untiled path


def lm_head_forward(x, w, b, *, batch_tile=None, vocab_tile=None,
                    out_dtype=jnp.float32):
    # out_dtype=jnp.bfloat16 halves HBM writeback on memory-bound chips (v7x);
    # f32 is the default to match the PyTorch module's output precision.
    B, S, D = x.shape
    V = w.shape[1]
    bt = batch_tile if batch_tile is not None else _pick_batch_tile(B, S)
    vt = vocab_tile if vocab_tile is not None else _pick_vocab_tile(V)
    assert B % bt == 0 and V % vt == 0
    nv = V // vt
    rows = bt * S

    vmem_est = (2 * 2 * D * vt + 2 * 4 * vt          # w / bias tiles (dbl-buffered)
                + 2 * 4 * rows * D                   # x block
                + 4 * 4 * rows * vt                  # logits compute + output buffers
                + 8 * rows)                          # running max / sum-exp
    vmem_limit = _clamp_vmem(2 * vmem_est)

    if nv == 1:
        kernel = functools.partial(_lm_head_fused_kernel, bt=bt, seq_len=S, d_model=D)
        return pl.pallas_call(
            kernel,
            out_shape=jax.ShapeDtypeStruct((B, S, V), out_dtype),
            grid=(B // bt,),
            in_specs=[pl.BlockSpec((bt, S, D), lambda i: (i, 0, 0)),
                      pl.BlockSpec((D, V), lambda i: (0, 0)),
                      pl.BlockSpec((1, V), lambda i: (0, 0))],
            out_specs=pl.BlockSpec((bt, S, V), lambda i: (i, 0, 0)),
            compiler_params=pltpu.CompilerParams(
                dimension_semantics=("parallel",),
                vmem_limit_bytes=vmem_limit),
        )(x, w, b)

    # Pass 1: vocab-tiled logits + running logsumexp.
    kernel = functools.partial(_lm_logits_lse_kernel, bt=bt, seq_len=S, d_model=D)
    logits, lse = pl.pallas_call(
        kernel,
        out_shape=(jax.ShapeDtypeStruct((B, S, V), jnp.float32),
                   jax.ShapeDtypeStruct((B, S, 1), jnp.float32)),
        grid=(B // bt, nv),
        in_specs=[pl.BlockSpec((bt, S, D), lambda i, j: (i, 0, 0)),
                  pl.BlockSpec((D, vt), lambda i, j: (0, j)),
                  pl.BlockSpec((1, vt), lambda i, j: (0, j))],
        out_specs=(pl.BlockSpec((bt, S, vt), lambda i, j: (i, 0, j)),
                   pl.BlockSpec((bt, S, 1), lambda i, j: (i, 0, 0))),
        scratch_shapes=[pltpu.VMEM((rows, 1), jnp.float32),
                        pltpu.VMEM((rows, 1), jnp.float32)],
        compiler_params=pltpu.CompilerParams(
            dimension_semantics=("parallel", "arbitrary"),
            vmem_limit_bytes=vmem_limit),
    )(x, w, b)

    # Pass 2: cheap elementwise normalization (logits - lse).
    return pl.pallas_call(
        _lm_normalize_kernel,
        out_shape=jax.ShapeDtypeStruct((B, S, V), out_dtype),
        grid=(B // bt, nv),
        in_specs=[pl.BlockSpec((bt, S, vt), lambda i, j: (i, 0, j)),
                  pl.BlockSpec((bt, S, 1), lambda i, j: (i, 0, 0))],
        out_specs=pl.BlockSpec((bt, S, vt), lambda i, j: (i, 0, j)),
        compiler_params=pltpu.CompilerParams(
            dimension_semantics=("parallel", "parallel")),
    )(logits, lse)


# ---------------------------------------------------------------------------
# Embedding (TransformerEmbedding stand-in) and full model forward
# ---------------------------------------------------------------------------
def sinusoidal_positional_encoding(seq_len, d_model):
    pos = jnp.arange(seq_len, dtype=jnp.float32)[:, None]
    i = jnp.arange(d_model // 2, dtype=jnp.float32)[None, :]
    angle = pos / jnp.power(10000.0, (2.0 * i) / d_model)
    pe = jnp.zeros((seq_len, d_model), jnp.float32)
    pe = pe.at[:, 0::2].set(jnp.sin(angle))
    pe = pe.at[:, 1::2].set(jnp.cos(angle))
    return pe


def embed_forward(tokens, tok_emb, pos_enc):
    # TODO(synk): TransformerEmbedding's internals are not given in the spec;
    # implemented as token-embedding gather + sinusoidal positional encoding,
    # dropout disabled (inference). The data-dependent row gather is left to
    # XLA rather than a Pallas DMA gather.
    return jnp.take(tok_emb, tokens, axis=0) + pos_enc[None]


def gmlp_language_model_forward(tokens, model_params, *, output_logits=True):
    emb = embed_forward(tokens, model_params["tok_emb"], model_params["pos_enc"])
    enc = gmlp_stack_forward(emb, model_params["gmlp"])
    if output_logits:
        return lm_head_forward(enc, model_params["head_w"], model_params["head_b"])
    return enc


# ---------------------------------------------------------------------------
# parameter init (per-layer weights stacked along a leading L axis)
# ---------------------------------------------------------------------------
def init_model_params(key, vocab_size, d_model, d_ffn, seq_len, num_layers):
    half = d_ffn // 2
    k_emb, k_blocks, k_hw, k_hb = jax.random.split(key, 4)
    w1s, b1s, wsps, w2s, b2s = [], [], [], [], []
    for l in range(num_layers):
        ks = jax.random.split(jax.random.fold_in(k_blocks, l), 5)
        w1s.append(jax.random.normal(ks[0], (d_model, d_ffn), jnp.float32) / jnp.sqrt(d_model))
        b1s.append(jax.random.normal(ks[1], (d_ffn,), jnp.float32) * 0.01)
        wsps.append(jax.random.normal(ks[2], (seq_len, seq_len), jnp.float32) * 0.01)
        w2s.append(jax.random.normal(ks[3], (half, d_model), jnp.float32) / jnp.sqrt(half))
        b2s.append(jax.random.normal(ks[4], (d_model,), jnp.float32) * 0.01)
    gmlp = dict(
        ln1_g=jnp.ones((num_layers, 1, d_model), jnp.float32),
        ln1_b=jnp.zeros((num_layers, 1, d_model), jnp.float32),
        w1=jnp.stack(w1s).astype(jnp.bfloat16),               # matmul weights in bf16
        b1=jnp.stack(b1s).reshape(num_layers, 1, d_ffn),
        sgu_g=jnp.ones((num_layers, 1, half), jnp.float32),
        sgu_b=jnp.zeros((num_layers, 1, half), jnp.float32),
        wsp=jnp.stack(wsps).astype(jnp.bfloat16),
        bsp=jnp.ones((num_layers, seq_len, 1), jnp.float32),  # gMLP SGU bias init = 1
        w2=jnp.stack(w2s).astype(jnp.bfloat16),
        b2=jnp.stack(b2s).reshape(num_layers, 1, d_model),
    )
    return dict(
        tok_emb=jax.random.normal(k_emb, (vocab_size, d_model), jnp.float32) * 0.02,
        pos_enc=sinusoidal_positional_encoding(seq_len, d_model),
        gmlp=gmlp,
        head_w=(jax.random.normal(k_hw, (d_model, vocab_size), jnp.float32)
                / jnp.sqrt(d_model)).astype(jnp.bfloat16),
        head_b=jax.random.normal(k_hb, (1, vocab_size), jnp.float32) * 0.01,
    )


# ---------------------------------------------------------------------------
# pure-JAX references (same math, same bf16 casts) for the sanity check
# ---------------------------------------------------------------------------
def gmlp_stack_reference(x, p):
    L, _, F = p["w1"].shape
    half = F // 2
    h = x.astype(jnp.float32)
    for l in range(L):
        res = h
        n = _layernorm(h, p["ln1_g"][l], p["ln1_b"][l])
        z = _gelu(jnp.einsum("bsd,df->bsf", n.astype(jnp.bfloat16), p["w1"][l],
                             preferred_element_type=jnp.float32) + p["b1"][l])
        u = z[..., :half].astype(jnp.bfloat16)
        v = _layernorm(z[..., half:], p["sgu_g"][l], p["sgu_b"][l])
        v = jnp.einsum("st,btf->bsf", p["wsp"][l], v.astype(jnp.bfloat16),
                       preferred_element_type=jnp.float32) + p["bsp"][l][None]
        out = jnp.einsum("bsf,fd->bsd", (u * v).astype(jnp.bfloat16), p["w2"][l],
                         preferred_element_type=jnp.float32) + p["b2"][l]
        h = res + out
    return h


def lm_head_reference(x, w, b):
    logits = jnp.einsum("bsd,dv->bsv", x.astype(jnp.bfloat16), w,
                        preferred_element_type=jnp.float32) + b
    return jax.nn.log_softmax(logits, axis=-1)


if __name__ == "__main__":
    B, S, D_MODEL, D_FFN, NUM_LAYERS, VOCAB = 2, 8, 32, 64, 2, 256

    key = jax.random.PRNGKey(0)
    k_tok, k_params = jax.random.split(key)
    tokens = jax.random.randint(k_tok, (B, S), 0, VOCAB, dtype=jnp.int32)
    params = init_model_params(k_params, VOCAB, D_MODEL, D_FFN, S, NUM_LAYERS)

    # forward through the Pallas kernels (embedding -> gMLP stack -> MLM head)
    emb = embed_forward(tokens, params["tok_emb"], params["pos_enc"])
    enc = jax.block_until_ready(gmlp_stack_forward(emb, params["gmlp"]))

    # exercise BOTH LM-head paths: vocab-tiled (vt=128, 2 tiles) and fused
    logp_tiled = jax.block_until_ready(
        lm_head_forward(enc, params["head_w"], params["head_b"], vocab_tile=128))
    logp_full = jax.block_until_ready(
        gmlp_language_model_forward(tokens, params))   # fused small-vocab path

    # pure-JAX references for each Pallas kernel
    enc_ref = jax.block_until_ready(gmlp_stack_reference(emb, params["gmlp"]))
    logp_ref = jax.block_until_ready(
        lm_head_reference(enc, params["head_w"], params["head_b"]))

    assert enc.shape == (B, S, D_MODEL)
    assert logp_tiled.shape == (B, S, VOCAB)
    assert logp_full.shape == (B, S, VOCAB)
    assert jnp.allclose(enc, enc_ref, rtol=1e-2, atol=1e-2), \
        "Pallas gMLP stack mismatch vs JAX reference"
    assert jnp.allclose(logp_tiled, logp_ref, rtol=1e-2, atol=1e-2), \
        "Pallas tiled LM head mismatch vs JAX reference"
    assert jnp.allclose(logp_full, logp_ref, rtol=1e-2, atol=1e-2), \
        "Pallas fused LM head mismatch vs JAX reference"
    print("KERNEL_OK")
</pallas_src>

<mosaic_0001>
module attributes {stable_mosaic.version = 11 : i64} {
  func.func @_gmlp_stack_kernel(%arg0: i32, %arg1: i32, %arg2: memref<1x8x32xf32, #tpu.memory_space<vmem>>, %arg3: memref<1x1x32xf32, #tpu.memory_space<vmem>>, %arg4: memref<1x1x32xf32, #tpu.memory_space<vmem>>, %arg5: memref<1x32x64xbf16, #tpu.memory_space<vmem>>, %arg6: memref<1x1x64xf32, #tpu.memory_space<vmem>>, %arg7: memref<1x1x32xf32, #tpu.memory_space<vmem>>, %arg8: memref<1x1x32xf32, #tpu.memory_space<vmem>>, %arg9: memref<1x8x8xbf16, #tpu.memory_space<vmem>>, %arg10: memref<1x8x1xf32, #tpu.memory_space<vmem>>, %arg11: memref<1x32x32xbf16, #tpu.memory_space<vmem>>, %arg12: memref<1x1x32xf32, #tpu.memory_space<vmem>>, %arg13: memref<1x8x32xf32, #tpu.memory_space<vmem>>) attributes {dimension_semantics = [#tpu.dimension_semantics<parallel>, #tpu.dimension_semantics<arbitrary>], iteration_bounds = array<i64: 2, 2>, scalar_prefetch = 0 : i64, scratch_operands = 0 : i64, tpu.core_type = #tpu.core_type<tc>, window_params = [{transform_indices = @transform_0, window_bounds = array<i64: 1, 8, 32>}, {transform_indices = @transform_1, window_bounds = array<i64: 1, 1, 32>}, {transform_indices = @transform_2, window_bounds = array<i64: 1, 1, 32>}, {transform_indices = @transform_3, window_bounds = array<i64: 1, 32, 64>}, {transform_indices = @transform_4, window_bounds = array<i64: 1, 1, 64>}, {transform_indices = @transform_5, window_bounds = array<i64: 1, 1, 32>}, {transform_indices = @transform_6, window_bounds = array<i64: 1, 1, 32>}, {transform_indices = @transform_7, window_bounds = array<i64: 1, 8, 8>}, {transform_indices = @transform_8, window_bounds = array<i64: 1, 8, 1>}, {transform_indices = @transform_9, window_bounds = array<i64: 1, 32, 32>}, {transform_indices = @transform_10, window_bounds = array<i64: 1, 1, 32>}, {transform_indices = @transform_11, window_bounds = array<i64: 1, 8, 32>}]} {
    %c0_i32 = arith.constant 0 : i32
    %0 = arith.cmpi eq, %arg1, %c0_i32 : i32
    %1 = arith.extui %0 : i1 to i32
    %c0_i32_0 = arith.constant 0 : i32
    %2 = arith.cmpi ne, %1, %c0_i32_0 : i32
    scf.if %2 {
      %c0_52 = arith.constant 0 : index
      %c0_53 = arith.constant 0 : index
      %c0_54 = arith.constant 0 : index
      %105 = vector.load %arg2[%c0_52, %c0_53, %c0_54] : memref<1x8x32xf32, #tpu.memory_space<vmem>>, vector<1x8x32xf32>
      %c0_55 = arith.constant 0 : index
      %c0_56 = arith.constant 0 : index
      %c0_57 = arith.constant 0 : index
      %106 = vector.load %arg13[%c0_55, %c0_56, %c0_57] : memref<1x8x32xf32, #tpu.memory_space<vmem>>, vector<1x8x32xf32>
      tpu.vector_store %arg13[%c0_55, %c0_56, %c0_57], %105 {strides = array<i32>} : memref<1x8x32xf32, #tpu.memory_space<vmem>>, vector<1x8x32xf32>,
    } else {
    }
    %c0 = arith.constant 0 : index
    %c0_1 = arith.constant 0 : index
    %c0_2 = arith.constant 0 : index
    %3 = vector.load %arg13[%c0, %c0_1, %c0_2] : memref<1x8x32xf32, #tpu.memory_space<vmem>>, vector<1x8x32xf32>
    %4 = vector.shape_cast %3 : vector<1x8x32xf32> to vector<8x32xf32>
    %c0_3 = arith.constant 0 : index
    %c0_4 = arith.constant 0 : index
    %c0_5 = arith.constant 0 : index
    %5 = vector.load %arg3[%c0_3, %c0_4, %c0_5] : memref<1x1x32xf32, #tpu.memory_space<vmem>>, vector<1x1x32xf32>
    %6 = vector.shape_cast %5 : vector<1x1x32xf32> to vector<1x32xf32>
    %c0_6 = arith.constant 0 : index
    %c0_7 = arith.constant 0 : index
    %c0_8 = arith.constant 0 : index
    %7 = vector.load %arg4[%c0_6, %c0_7, %c0_8] : memref<1x1x32xf32, #tpu.memory_space<vmem>>, vector<1x1x32xf32>
    %8 = vector.shape_cast %7 : vector<1x1x32xf32> to vector<1x32xf32>
    %cst = arith.constant dense<0.000000e+00> : vector<8xf32>
    %9 = vector.multi_reduction <add>, %4, %cst [1] : vector<8x32xf32> to vector<8xf32>
    %10 = vector.shape_cast %9 : vector<8xf32> to vector<8x1xf32>
    %cst_9 = arith.constant 3.200000e+01 : f32
    %11 = vector.broadcast %cst_9 : f32 to vector<8x1xf32>
    %12 = arith.divf %10, %11 : vector<8x1xf32>
    %13 = vector.broadcast %12 : vector<8x1xf32> to vector<8x32xf32>
    %14 = arith.subf %4, %13 : vector<8x32xf32>
    %15 = arith.mulf %14, %14 : vector<8x32xf32>
    %cst_10 = arith.constant dense<0.000000e+00> : vector<8xf32>
    %16 = vector.multi_reduction <add>, %15, %cst_10 [1] : vector<8x32xf32> to vector<8xf32>
    %17 = vector.shape_cast %16 : vector<8xf32> to vector<8x1xf32>
    %cst_11 = arith.constant 3.200000e+01 : f32
    %18 = vector.broadcast %cst_11 : f32 to vector<8x1xf32>
    %19 = arith.divf %17, %18 : vector<8x1xf32>
    %20 = vector.broadcast %12 : vector<8x1xf32> to vector<8x32xf32>
    %21 = arith.subf %4, %20 : vector<8x32xf32>
    %cst_12 = arith.constant 9.99999974E-6 : f32
    %22 = vector.broadcast %cst_12 : f32 to vector<8x1xf32>
    %23 = arith.addf %19, %22 : vector<8x1xf32>
    %24 = math.rsqrt %23 : vector<8x1xf32>
    %25 = vector.broadcast %24 : vector<8x1xf32> to vector<8x32xf32>
    %26 = arith.mulf %21, %25 : vector<8x32xf32>
    %27 = vector.broadcast %6 : vector<1x32xf32> to vector<8x32xf32>
    %28 = arith.mulf %26, %27 : vector<8x32xf32>
    %29 = vector.broadcast %8 : vector<1x32xf32> to vector<8x32xf32>
    %30 = arith.addf %28, %29 : vector<8x32xf32>
    %31 = arith.truncf %30 : vector<8x32xf32> to vector<8x32xbf16>
    %c0_13 = arith.constant 0 : index
    %c0_14 = arith.constant 0 : index
    %c0_15 = arith.constant 0 : index
    %32 = vector.load %arg5[%c0_13, %c0_14, %c0_15] : memref<1x32x64xbf16, #tpu.memory_space<vmem>>, vector<1x32x64xbf16>
    %33 = vector.shape_cast %32 : vector<1x32x64xbf16> to vector<32x64xbf16>
    %cst_16 = arith.constant dense<0.000000e+00> : vector<8x64xf32>
    %34 = tpu.matmul %31, %33, %cst_16 {dimension_numbers = #tpu.dot_dimension_numbers<[1], [0], [0], [1], [0, 0, 1, 1], [], []>} : vector<8x32xbf16>, vector<32x64xbf16>, vector<8x64xf32> -> vector<8x64xf32>
    %c0_17 = arith.constant 0 : index
    %c0_18 = arith.constant 0 : index
    %c0_19 = arith.constant 0 : index
    %35 = vector.load %arg6[%c0_17, %c0_18, %c0_19] : memref<1x1x64xf32, #tpu.memory_space<vmem>>, vector<1x1x64xf32>
    %36 = vector.shape_cast %35 : vector<1x1x64xf32> to vector<1x64xf32>
    %37 = vector.broadcast %36 : vector<1x64xf32> to vector<8x64xf32>
    %38 = arith.addf %34, %37 : vector<8x64xf32>
    %cst_20 = arith.constant 5.000000e-01 : f32
    %39 = vector.broadcast %cst_20 : f32 to vector<8x64xf32>
    %40 = arith.mulf %39, %38 : vector<8x64xf32>
    %cst_21 = arith.constant 4.471500e-02 : f32
    %41 = vector.broadcast %cst_21 : f32 to vector<8x64xf32>
    %42 = arith.mulf %41, %38 : vector<8x64xf32>
    %43 = arith.mulf %42, %38 : vector<8x64xf32>
    %44 = arith.mulf %43, %38 : vector<8x64xf32>
    %45 = arith.addf %38, %44 : vector<8x64xf32>
    %cst_22 = arith.constant 0.797884583 : f32
    %46 = vector.broadcast %cst_22 : f32 to vector<8x64xf32>
    %47 = arith.mulf %46, %45 : vector<8x64xf32>
    %48 = math.tanh %47 : vector<8x64xf32>
    %cst_23 = arith.constant 1.000000e+00 : f32
    %49 = vector.broadcast %cst_23 : f32 to vector<8x64xf32>
    %50 = arith.addf %49, %48 : vector<8x64xf32>
    %51 = arith.mulf %40, %50 : vector<8x64xf32>
    %52 = vector.extract_strided_slice %51 {offsets = [0, 0], sizes = [8, 32], strides = [1, 1]} : vector<8x64xf32> to vector<8x32xf32>
    %53 = arith.truncf %52 : vector<8x32xf32> to vector<8x32xbf16>
    %54 = vector.extract_strided_slice %51 {offsets = [0, 32], sizes = [8, 32], strides = [1, 1]} : vector<8x64xf32> to vector<8x32xf32>
    %c0_24 = arith.constant 0 : index
    %c0_25 = arith.constant 0 : index
    %c0_26 = arith.constant 0 : index
    %55 = vector.load %arg7[%c0_24, %c0_25, %c0_26] : memref<1x1x32xf32, #tpu.memory_space<vmem>>, vector<1x1x32xf32>
    %56 = vector.shape_cast %55 : vector<1x1x32xf32> to vector<1x32xf32>
    %c0_27 = arith.constant 0 : index
    %c0_28 = arith.constant 0 : index
    %c0_29 = arith.constant 0 : index
    %57 = vector.load %arg8[%c0_27, %c0_28, %c0_29] : memref<1x1x32xf32, #tpu.memory_space<vmem>>, vector<1x1x32xf32>
    %58 = vector.shape_cast %57 : vector<1x1x32xf32> to vector<1x32xf32>
    %cst_30 = arith.constant dense<0.000000e+00> : vector<8xf32>
    %59 = vector.multi_reduction <add>, %54, %cst_30 [1] : vector<8x32xf32> to vector<8xf32>
    %60 = vector.shape_cast %59 : vector<8xf32> to vector<8x1xf32>
    %cst_31 = arith.constant 3.200000e+01 : f32
    %61 = vector.broadcast %cst_31 : f32 to vector<8x1xf32>
    %62 = arith.divf %60, %61 : vector<8x1xf32>
    %63 = vector.broadcast %62 : vector<8x1xf32> to vector<8x32xf32>
    %64 = arith.subf %54, %63 : vector<8x32xf32>
    %65 = arith.mulf %64, %64 : vector<8x32xf32>
    %cst_32 = arith.constant dense<0.000000e+00> : vector<8xf32>
    %66 = vector.multi_reduction <add>, %65, %cst_32 [1] : vector<8x32xf32> to vector<8xf32>
    %67 = vector.shape_cast %66 : vector<8xf32> to vector<8x1xf32>
    %cst_33 = arith.constant 3.200000e+01 : f32
    %68 = vector.broadcast %cst_33 : f32 to vector<8x1xf32>
    %69 = arith.divf %67, %68 : vector<8x1xf32>
    %70 = vector.broadcast %62 : vector<8x1xf32> to vector<8x32xf32>
    %71 = arith.subf %54, %70 : vector<8x32xf32>
    %cst_34 = arith.constant 9.99999974E-6 : f32
    %72 = vector.broadcast %cst_34 : f32 to vector<8x1xf32>
    %73 = arith.addf %69, %72 : vector<8x1xf32>
    %74 = math.rsqrt %73 : vector<8x1xf32>
    %75 = vector.broadcast %74 : vector<8x1xf32> to vector<8x32xf32>
    %76 = arith.mulf %71, %75 : vector<8x32xf32>
    %77 = vector.broadcast %56 : vector<1x32xf32> to vector<8x32xf32>
    %78 = arith.mulf %76, %77 : vector<8x32xf32>
    %79 = vector.broadcast %58 : vector<1x32xf32> to vector<8x32xf32>
    %80 = arith.addf %78, %79 : vector<8x32xf32>
    %81 = vector.shape_cast %80 : vector<8x32xf32> to vector<1x8x32xf32>
    %82 = arith.truncf %81 : vector<1x8x32xf32> to vector<1x8x32xbf16>
    %c0_35 = arith.constant 0 : index
    %c0_36 = arith.constant 0 : index
    %c0_37 = arith.constant 0 : index
    %83 = vector.load %arg9[%c0_35, %c0_36, %c0_37] : memref<1x8x8xbf16, #tpu.memory_space<vmem>>, vector<1x8x8xbf16>
    "tpu.trace_start"() <{level = 10 : i32, message = "bst,btf->bsf"}> : () -> ()
    %cst_38 = arith.constant dense<0.000000e+00> : vector<1x8x32xf32>
    %84 = tpu.matmul %83, %82, %cst_38 {dimension_numbers = #tpu.dot_dimension_numbers<[2], [1], [1], [2], [0, 0, 0, 1, 1, 2], [0], [0]>} : vector<1x8x8xbf16>, vector<1x8x32xbf16>, vector<1x8x32xf32> -> vector<1x8x32xf32>
    "tpu.trace_stop"() : () -> ()
    %c0_39 = arith.constant 0 : index
    %c0_40 = arith.constant 0 : index
    %c0_41 = arith.constant 0 : index
    %85 = vector.load %arg10[%c0_39, %c0_40, %c0_41] : memref<1x8x1xf32, #tpu.memory_space<vmem>>, vector<1x8x1xf32>
    %86 = vector.shape_cast %85 : vector<1x8x1xf32> to vector<8x1xf32>
    %87 = vector.shape_cast %86 : vector<8x1xf32> to vector<1x8x1xf32>
    %88 = vector.broadcast %87 : vector<1x8x1xf32> to vector<1x8x32xf32>
    %89 = arith.addf %84, %88 : vector<1x8x32xf32>
    %90 = vector.shape_cast %53 : vector<8x32xbf16> to vector<1x8x32xbf16>
    %91 = arith.extf %90 : vector<1x8x32xbf16> to vector<1x8x32xf32>
    %92 = arith.mulf %91, %89 : vector<1x8x32xf32>
    %93 = vector.shape_cast %92 : vector<1x8x32xf32> to vector<8x32xf32>
    %94 = arith.truncf %93 : vector<8x32xf32> to vector<8x32xbf16>
    %c0_42 = arith.constant 0 : index
    %c0_43 = arith.constant 0 : index
    %c0_44 = arith.constant 0 : index
    %95 = vector.load %arg11[%c0_42, %c0_43, %c0_44] : memref<1x32x32xbf16, #tpu.memory_space<vmem>>, vector<1x32x32xbf16>
    %96 = vector.shape_cast %95 : vector<1x32x32xbf16> to vector<32x32xbf16>
    %cst_45 = arith.constant dense<0.000000e+00> : vector<8x32xf32>
    %97 = tpu.matmul %94, %96, %cst_45 {dimension_numbers = #tpu.dot_dimension_numbers<[1], [0], [0], [1], [0, 0, 1, 1], [], []>} : vector<8x32xbf16>, vector<32x32xbf16>, vector<8x32xf32> -> vector<8x32xf32>
    %c0_46 = arith.constant 0 : index
    %c0_47 = arith.constant 0 : index
    %c0_48 = arith.constant 0 : index
    %98 = vector.load %arg12[%c0_46, %c0_47, %c0_48] : memref<1x1x32xf32, #tpu.memory_space<vmem>>, vector<1x1x32xf32>
    %99 = vector.shape_cast %98 : vector<1x1x32xf32> to vector<1x32xf32>
    %100 = vector.broadcast %99 : vector<1x32xf32> to vector<8x32xf32>
    %101 = arith.addf %97, %100 : vector<8x32xf32>
    %102 = arith.addf %4, %101 : vector<8x32xf32>
    %103 = vector.shape_cast %102 : vector<8x32xf32> to vector<1x8x32xf32>
    %c0_49 = arith.constant 0 : index
    %c0_50 = arith.constant 0 : index
    %c0_51 = arith.constant 0 : index
    %104 = vector.load %arg13[%c0_49, %c0_50, %c0_51] : memref<1x8x32xf32, #tpu.memory_space<vmem>>, vector<1x8x32xf32>
    tpu.vector_store %arg13[%c0_49, %c0_50, %c0_51], %103 {strides = array<i32>} : memref<1x8x32xf32, #tpu.memory_space<vmem>>, vector<1x8x32xf32>,
    return
  }
  func.func @transform_0(%arg0: i32, %arg1: i32) -> (i32, i32, i32) {
    %c0_i32 = arith.constant 0 : i32
    %c0_i32_0 = arith.constant 0 : i32
    %c0_i32_1 = arith.constant 0 : i32
    return %arg0, %c0_i32, %c0_i32_0 : i32, i32, i32
  }
  func.func @transform_1(%arg0: i32, %arg1: i32) -> (i32, i32, i32) {
    %c0_i32 = arith.constant 0 : i32
    %c0_i32_0 = arith.constant 0 : i32
    %c0_i32_1 = arith.constant 0 : i32
    return %arg1, %c0_i32, %c0_i32_0 : i32, i32, i32
  }
  func.func @transform_2(%arg0: i32, %arg1: i32) -> (i32, i32, i32) {
    %c0_i32 = arith.constant 0 : i32
    %c0_i32_0 = arith.constant 0 : i32
    %c0_i32_1 = arith.constant 0 : i32
    return %arg1, %c0_i32, %c0_i32_0 : i32, i32, i32
  }
  func.func @transform_3(%arg0: i32, %arg1: i32) -> (i32, i32, i32) {
    %c0_i32 = arith.constant 0 : i32
    %c0_i32_0 = arith.constant 0 : i32
    %c0_i32_1 = arith.constant 0 : i32
    return %arg1, %c0_i32, %c0_i32_0 : i32, i32, i32
  }
  func.func @transform_4(%arg0: i32, %arg1: i32) -> (i32, i32, i32) {
    %c0_i32 = arith.constant 0 : i32
    %c0_i32_0 = arith.constant 0 : i32
    %c0_i32_1 = arith.constant 0 : i32
    return %arg1, %c0_i32, %c0_i32_0 : i32, i32, i32
  }
  func.func @transform_5(%arg0: i32, %arg1: i32) -> (i32, i32, i32) {
    %c0_i32 = arith.constant 0 : i32
    %c0_i32_0 = arith.constant 0 : i32
    %c0_i32_1 = arith.constant 0 : i32
    return %arg1, %c0_i32, %c0_i32_0 : i32, i32, i32
  }
  func.func @transform_6(%arg0: i32, %arg1: i32) -> (i32, i32, i32) {
    %c0_i32 = arith.constant 0 : i32
    %c0_i32_0 = arith.constant 0 : i32
    %c0_i32_1 = arith.constant 0 : i32
    return %arg1, %c0_i32, %c0_i32_0 : i32, i32, i32
  }
  func.func @transform_7(%arg0: i32, %arg1: i32) -> (i32, i32, i32) {
    %c0_i32 = arith.constant 0 : i32
    %c0_i32_0 = arith.constant 0 : i32
    %c0_i32_1 = arith.constant 0 : i32
    return %arg1, %c0_i32, %c0_i32_0 : i32, i32, i32
  }
  func.func @transform_8(%arg0: i32, %arg1: i32) -> (i32, i32, i32) {
    %c0_i32 = arith.constant 0 : i32
    %c0_i32_0 = arith.constant 0 : i32
    %c0_i32_1 = arith.constant 0 : i32
    return %arg1, %c0_i32, %c0_i32_0 : i32, i32, i32
  }
  func.func @transform_9(%arg0: i32, %arg1: i32) -> (i32, i32, i32) {
    %c0_i32 = arith.constant 0 : i32
    %c0_i32_0 = arith.constant 0 : i32
    %c0_i32_1 = arith.constant 0 : i32
    return %arg1, %c0_i32, %c0_i32_0 : i32, i32, i32
  }
  func.func @transform_10(%arg0: i32, %arg1: i32) -> (i32, i32, i32) {
    %c0_i32 = arith.constant 0 : i32
    %c0_i32_0 = arith.constant 0 : i32
    %c0_i32_1 = arith.constant 0 : i32
    return %arg1, %c0_i32, %c0_i32_0 : i32, i32, i32
  }
  func.func @transform_11(%arg0: i32, %arg1: i32) -> (i32, i32, i32) {
    %c0_i32 = arith.constant 0 : i32
    %c0_i32_0 = arith.constant 0 : i32
    %c0_i32_1 = arith.constant 0 : i32
    return %arg0, %c0_i32, %c0_i32_0 : i32, i32, i32
  }
}

</mosaic_0001>

<bundles_post_ra>
// kernel: tpu_custom_call.1
= control target key start
LH: loop header
LB: loop body
LE: loop exit
PB: predicated region body
PF: predicated region fallthrough
CT: control target
= control target key end

     0   :  { %s2208_s0 = inlined_call_operand.vmem [shape: f32[2,8,32], index: 0, kind: input, shape index: {}]   ;;  %s2209_s1 = inlined_call_operand.vmem [shape: f32[2,1,32], index: 1, kind: input, shape index: {}]   ;;  %s2210_s2 = inlined_call_operand.vmem [shape: f32[2,1,32], index: 2, kind: input, shape index: {}]   ;;  %s2211_s3 = inlined_call_operand.hbm [shape: bf16[2,32,64], index: 3, kind: input, shape index: {}]   ;;  %s2212_s4 = inlined_call_operand.hbm [shape: f32[2,1,64], index: 4, kind: input, shape index: {}]   ;;  %s2213_s5 = inlined_call_operand.hbm [shape: f32[2,1,32], index: 5, kind: input, shape index: {}]   ;;  %s2214_s6 = inlined_call_operand.hbm [shape: f32[2,1,32], index: 6, kind: input, shape index: {}]   ;;  %s2215_s7 = inlined_call_operand.hbm [shape: bf16[2,8,8], index: 7, kind: input, shape index: {}]   ;;  %s2216_s8 = inlined_call_operand.vmem [shape: f32[2,8,1], index: 8, kind: input, shape index: {}]   ;;  %s2217_s9 = inlined_call_operand.vmem [shape: bf16[2,32,32], index: 9, kind: input, shape index: {}]   ;;  %s2218_s10 = inlined_call_operand.vmem [shape: f32[2,1,32], index: 10, kind: input, shape index: {}]   ;;  %s2219_s11 = inlined_call_operand.hbm [shape: f32[2,8,32], index: 11, kind: output, shape index: {}]  }
   0x1   :  { %2239 = sst [smem:[#allocation28_spill]] %s2210_s2 }
   0x2   :  { %2240 = sst [smem:[#allocation29_spill]] %s2211_s3 }
   0x3   :  { %2241 = sst [smem:[#allocation30_spill]] %s2212_s4 }
   0x4   :  { %2242 = sst [smem:[#allocation31_spill]] %s2213_s5 }
   0x5   :  { %2243 = sst [smem:[#allocation32_spill]] %s2214_s6 }
   0x6   :  { %2244 = sst [smem:[#allocation33_spill]] %s2215_s7 }
   0x7   :  { %2245 = sst [smem:[#allocation34_spill]] %s2216_s8 }
   0x8   :  { %2246 = sst [smem:[#allocation35_spill]] %s2217_s9 }
   0x9   :  { %2247 = sst [smem:[#allocation36_spill]] %s2218_s10 }
   0xa   :  { %2248 = sst [smem:[#allocation37_spill]] %s2219_s11 }
   0xb   :  { %16 = vsyncpa [#allocation3], 0 }
   0xc   :  { %18 = vsyncpa [#allocation3 + $0x1], 0 }
   0xd   :  { %19 = vsyncpa [#allocation6], 0 }
   0xe   :  { %21 = vsyncpa [#allocation6 + $0x1], 0 }
   0xf   :  { %22 = vsyncpa [#allocation9], 0 }
  0x10   :  { %24 = vsyncpa [#allocation9 + $0x1], 0 }
  0x11   :  { %25 = vsyncpa [#allocation4], 0 }
  0x12   :  { %27 = vsyncpa [#allocation4 + $0x1], 0  ;;  %s1735_s17 = smov 0   ;;  %s1737_s18 = smov 0  }
  0x13   :  { %s1739_s19 = smov 0   ;;  %s1741_s20 = smov 0  }
  0x14   :  { %s1743_s21 = smov 0   ;;  %s1745_s22 = smov 0  }
  0x15   :  { %s1747_s23 = smov 0   ;;  %s1749_s24 = smov 0  }
  0x16   :  { %s1751_s25 = smov 0   ;;  %s1753_s26 = smov 0  }
  0x17   :  { %s1755_s27 = smov 0  }
  0x18 LB: > { %2249 = sst [smem:[#allocation16_spill]] %s1620_s17  ;;  %s1789_s28 = sadd.s32 4294967295, %s1660_s27   ;;  %s1660_s27 = sphi %s1755_s27, %s33_s27   ;;  %s1656_s26 = sphi %s1753_s26, %s2307_s26   ;;  %s1652_s25 = sphi %s1751_s25, %s2306_s25   ;;  %s1648_s24 = sphi %s1749_s24, %s2305_s24   ;;  %s1644_s23 = sphi %s1747_s23, %s2304_s23   ;;  %s1640_s22 = sphi %s1745_s22, %s2312_s22   ;;  %s1636_s21 = sphi %s1743_s21, %s2311_s21   ;;  %s1632_s20 = sphi %s1741_s20, %s2310_s20   ;;  %s1628_s19 = sphi %s1739_s19, %s2301_s19   ;;  %s1624_s18 = sphi %s1737_s18, %s2309_s18   ;;  %s1620_s17 = sphi %s1735_s17, %s2308_s17  }
  0x19   : > { %2250 = sst [smem:[#allocation17_spill]] %s1628_s19  ;;  %s1170_s29 = sadd.s32 4294967294, %s1660_s27  }
  0x1a   : > { %2251 = sst [smem:[#allocation18_spill]] %s1640_s22  ;;  %s42_s30 = sadd.s32 1, %s1652_s25 }
  0x1b   : > { %2252 = sst [smem:[#allocation19_spill]] %s1652_s25  ;;  %s45_s12 = sadd.s32 1, %s1656_s26 }
  0x1c   : > { %2253 = sst [smem:[#allocation20_spill]] %s1656_s26  ;;  %p43_p0 = scmp.ge.s32.totalorder %s42_s30, 2 }
  0x1d   : > { %2254 = sst [smem:[#allocation21_spill]] %s1660_s27  ;;  %s130_s13 = sadd.s32 1, %s1640_s22 }
  0x1e   : > { %p137_p1 = scmp.ne.s32.totalorder %s1640_s22, %s1636_s21  ;;  %p138_p2 = scmp.eq.s32.totalorder %s1660_s27, 0 }
  0x1f   : > { %s2314_s30 = smov (%p43_p0, %s42_s30), 0  ;;  %s2316_s12 = smov (!%p43_p0, %s45_s12), %s1656_s26 }
  0x20   : > { %2255 = sst [smem:[#allocation22_spill]] %s2314_s30  ;;  %s127_s14 = ssub.s32 %s1652_s25, %s2314_s30 }
  0x21   : > { %p1803_p3 = por %p138_p2, %p137_p1  ;;  %p47_p4 = scmp.ge.s32.totalorder %s2316_s12, 2 }
  0x22   : > { %p128_p5 = scmp.eq.s32.totalorder %s127_s14, 0  ;;  %p143_p6 = scmp.ne.s32.totalorder %s1636_s21, %s1632_s20 }
  0x23   : > { %p144_p7 = scmp.eq.s32.totalorder %s1789_s28, 0  ;;  %s2318_s12 = smov (%p47_p4, %s2316_s12), 0 }
  0x24   : > { %2257 = sst [smem:[#allocation23_spill]] %s2318_s12  ;;  %s335_s11 = ssub.s32 %s1656_s26, %s2318_s12 }
  0x25   : > { %s1812_s16 = scalar_select %p128_p5, %s1640_s22, %s130_s13  }
  0x26   : > { %p1814_p8 = por %p144_p7, %p143_p6  ;;  %p336_p9 = scmp.eq.s32.totalorder %s335_s11, 0 }
  0x27   : > { %2258 = sst [smem:[#allocation24_spill]] %s1812_s16  ;;  %s338_s10 = sadd.s32 1, %s1628_s19 }
  0x28   : > { %s2259_s30 = scalar_select %p1814_p8, 1, 0 }
  0x29   : > { %p348_p10 = scmp.ne.s32.totalorder %s1628_s19, %s1624_s18  ;;  %p349_p11 = scmp.eq.s32.totalorder %s1789_s28, 3 }
  0x2a   : > { %s1825_s20 = scalar_select %p336_p9, %s1628_s19, %s338_s10  }
  0x2b   : > { %p1827_p12 = por %p349_p11, %p348_p10  ;;  %p354_p13 = scmp.ne.s32.totalorder %s1624_s18, %s1620_s17 }
  0x2c   : > { %2260 = sst [smem:[#allocation25_spill]] %s1825_s20  ;;  %p355_p0 = scmp.eq.s32.totalorder %s1170_s29, 3 }
  0x2d   : > { %s2261_s14 = scalar_select %p1827_p12, 1, 0 }
  0x2e   : > { %p1271_p1 = scmp.lt.s32.totalorder %s1660_s27, 4  ;;  %s1835_s13 = sand.u32 1, %s1640_s22  }
  0x2f   : > { %2262 = sst [smem:[#allocation26_spill]] %s2261_s14  ;;  %p1837_p2 = por %p355_p0, %p354_p13 }
  0x30   : > { %p1844_p4 = pnand %p1271_p1, %p1803_p3  ;;  %s1849_s26 = sshll.u32 %s1652_s25, 4 }
  0x31   : > { %s2263_s11 = scalar_select %p1837_p2, 1, 0 }
  0x32   : > { %s2265_s10 = scalar_select %p1844_p4, 1, 0 }
  0x33   : > { %2264 = sst [smem:[#allocation27_spill]] %s2263_s11  ;;  %s2266_s4 = sld [smem:[#allocation30_spill]] }
  0x34   : > { %s418_s20 = scalar_lea.vmem [#allocation5], %s1835_s13  ;;  %s2267_s15 = sand.u32 1, %s1660_s27  }
  0x35   : > { %s425_s12 = sshll.u32 %s418_s20, 4  ;;  %s1864_s19 = scalar_lea.sflag [#allocation6], %s2267_s15  ;;  %s1859_s12 = int_to_ptr.vmem [resolvable:$true] %s425_s12 }
  0x36   : > { %p1870_p7 = pneg %p1844_p4 }
  0x39   : > { %s1855_s22 = scalar_lea.hbm %s2266_s4, %s1849_s26  ;;  %s1385_s17 = scalar_lea.hbm %s2266_s4, 32 }
  0x3a   : > { %s1380_s11 = scalar_lea.hbm %s1855_s22, 16  ;;  %p1386_p11 = scmp.lt.u32.totalorder %s1855_s22, %s2266_s4 }
  0x3b   : > { %p1381_p6 = scmp.ne.s32.totalorder %s1855_s22, %s1380_s11  ;;  %p1387_p13 = scmp.lt.u32.totalorder %s1385_s17, %s1380_s11 }
  0x3c   : > { %p1389_p1 = scmp.lt.u32.totalorder %s1380_s11, %s1855_s22 }
  0x3d   : > { %p1383_p9 = pnand %p1870_p7, %p1381_p6  ;;  %p1388_p0 = por %p1387_p13, %p1386_p11 }
  0x3f   : > { %p1384_p10 = pneg %p1383_p9  ;;  %p1390_p5 = por %p1389_p1, %p1388_p0 }
  0x41   : > { %p1391_p3 = pnand %p1390_p5, %p1384_p10 }
  0x43   : > { %1394 = shalt.err (!%p1391_p3)
}
  0x44   : > { %s1395_s15 = scalar_lea.vmem %s1859_s12, 16  ;;  %s1662_s29 = smov [#allocation5]  }
  0x45   : > { %p1396_p6 = scmp.ne.s32.totalorder %s1859_s12, %s1395_s15  ;;  %s1400_s20 = sshll.u32 %s1662_s29, 4  ;;  %s1401_s20 = int_to_ptr.vmem [resolvable:$false] %s1400_s20 }
  0x46   : > { %s1402_s9 = scalar_lea.vmem %s1401_s20, 32  ;;  %p1403_p12 = scmp.lt.s32.totalorder %s1859_s12, %s1401_s20 }
  0x47   : > { %p1398_p9 = pnand %p1396_p6, %p1870_p7  ;;  %p1404_p8 = scmp.lt.s32.totalorder %s1402_s9, %s1395_s15 }
  0x49   : > { %p1399_p2 = pneg %p1398_p9  ;;  %p1405_p11 = por %p1404_p8, %p1403_p12 }
  0x4b   : > { %p1406_p13 = pnand %p1405_p11, %p1399_p2 }
  0x4d   : > { %1409 = shalt.err (!%p1406_p13)
}
  0x4e   : > { %1257 = dma.hbm_to_vmem [thread:$0]  (!%p1844_p4), %s1855_s22, 16, %s1859_s12, %s1864_s19  }
  0x4f   : > { %p2269_p5 = scmp.lt.s32.totalorder %s1660_s27, 5  ;;  %p2270_p3 = scmp.ge.s32.totalorder %s1660_s27, 1 }
  0x50   : > { %s2272_s6 = sld [smem:[#allocation32_spill]]  ;;  %s452_s29 = scalar_lea.vmem [#allocation8], %s1835_s13 }
  0x51   : > { %p1898_p10 = pnand %p2270_p3, %p2269_p5  ;;  %s459_s20 = sshll.u32 %s452_s29, 4  ;;  %s460_s20 = int_to_ptr.vmem [resolvable:$true] %s459_s20 }
  0x52   : > { %s2273_s9 = sand.u32 1, %s1660_s27  }
  0x53   : > { %s2271_s17 = scalar_select %p1898_p10, 1, 0 }
  0x54   : > { %s1911_s22 = scalar_lea.sflag [#allocation9], %s2273_s9 }
  0x56   : > { %s1906_s15 = scalar_lea.hbm %s2272_s6, %s1849_s26  ;;  %s1415_s14 = scalar_lea.hbm %s2272_s6, 32 }
  0x57   : > { %s1410_s12 = scalar_lea.hbm %s1906_s15, 16  ;;  %p1416_p0 = scmp.lt.u32.totalorder %s1906_s15, %s2272_s6 }
  0x58   : > { %p1411_p8 = scmp.ne.s32.totalorder %s1906_s15, %s1410_s12  ;;  %p1417_p1 = scmp.lt.u32.totalorder %s1415_s14, %s1410_s12 }
  0x59   : > { %p1419_p9 = scmp.lt.u32.totalorder %s1410_s12, %s1906_s15 }
  0x5a   : > { %p1413_p12 = pnand %p1411_p8, %p1870_p7  ;;  %p1418_p6 = por %p1417_p1, %p1416_p0 }
  0x5c   : > { %p1414_p2 = pneg %p1413_p12  ;;  %p1420_p11 = por %p1419_p9, %p1418_p6 }
  0x5e   : > { %p1421_p13 = pnand %p1420_p11, %p1414_p2 }
  0x60   : > { %1424 = shalt.err (!%p1421_p13)
}
  0x61   : > { %s1425_s29 = scalar_lea.vmem %s460_s20, 16  ;;  %s1663_s9 = smov [#allocation8]  }
  0x62   : > { %p1426_p5 = scmp.ne.s32.totalorder %s460_s20, %s1425_s29  ;;  %s1430_s27 = sshll.u32 %s1663_s9, 4  ;;  %s1431_s27 = int_to_ptr.vmem [resolvable:$false] %s1430_s27 }
  0x63   : > { %s1432_s4 = scalar_lea.vmem %s1431_s27, 32  ;;  %p1433_p12 = scmp.lt.s32.totalorder %s460_s20, %s1431_s27 }
  0x64   : > { %p1428_p3 = pnand %p1426_p5, %p1870_p7  ;;  %p1434_p10 = scmp.lt.s32.totalorder %s1432_s4, %s1425_s29 }
  0x66   : > { %p1429_p8 = pneg %p1428_p3  ;;  %p1435_p4 = por %p1434_p10, %p1433_p12 }
  0x68   : > { %p1436_p0 = pnand %p1435_p4, %p1429_p8 }
  0x6a   : > { %1439 = shalt.err (!%p1436_p0)
}
  0x6b   : > { %p2274_p1 = scmp.ne.s32.totalorder %s2265_s10, 0  ;;  %s1173_s2 = sshll.u32 %s1835_s13, 4 }
  0x6c   : > { %s1207_s8 = sshll.u32 %s1652_s25, 8  ;;  %s2275_s3 = sld [smem:[#allocation29_spill]] }
  0x6d   : > { %1263 = dma.hbm_to_vmem [thread:$0]  (!%p2274_p1), %s1906_s15, 16, %s460_s20, %s1911_s22  }
  0x6e   : > { %s398_s27 = scalar_lea.vmem [#allocation2], %s1173_s2  ;;  %s395_s9 = scalar_lea.sflag [#allocation3], %s1835_s13 }
  0x6f   : > { %s405_s29 = sshll.u32 %s398_s27, 4  ;;  %s1938_s29 = int_to_ptr.vmem [resolvable:$true] %s405_s29 }
  0x72   : > { %s1936_s11 = scalar_lea.hbm %s2275_s3, %s1207_s8  ;;  %s1445_s12 = scalar_lea.hbm %s2275_s3, 512 }
  0x73   : > { %s1440_s4 = scalar_lea.hbm %s1936_s11, 256  ;;  %p1446_p6 = scmp.lt.u32.totalorder %s1936_s11, %s2275_s3 }
  0x74   : > { %p1441_p4 = scmp.ne.s32.totalorder %s1936_s11, %s1440_s4  ;;  %p1447_p9 = scmp.lt.u32.totalorder %s1445_s12, %s1440_s4 }
  0x75   : > { %p1449_p13 = scmp.lt.u32.totalorder %s1440_s4, %s1936_s11 }
  0x76   : > { %p1443_p10 = pnand %p1441_p4, %p1870_p7  ;;  %p1448_p11 = por %p1447_p9, %p1446_p6 }
  0x78   : > { %p1444_p2 = pneg %p1443_p10  ;;  %p1450_p5 = por %p1449_p13, %p1448_p11 }
  0x7a   : > { %p1451_p3 = pnand %p1450_p5, %p1444_p2 }
  0x7c   : > { %1454 = shalt.err (!%p1451_p3)
}
  0x7d   : > { %s1455_s2 = scalar_lea.vmem %s1938_s29, 256  ;;  %s1664_s27 = smov [#allocation2]  }
  0x7e   : > { %p1456_p8 = scmp.ne.s32.totalorder %s1938_s29, %s1455_s2  ;;  %s1460_s15 = sshll.u32 %s1664_s27, 4  ;;  %s1461_s15 = int_to_ptr.vmem [resolvable:$false] %s1460_s15 }
  0x7f   : > { %s1462_s20 = scalar_lea.vmem %s1461_s15, 512  ;;  %p1463_p4 = scmp.lt.s32.totalorder %s1938_s29, %s1461_s15 }
  0x80   : > { %p1458_p12 = pnand %p1456_p8, %p1870_p7  ;;  %p1464_p10 = scmp.lt.s32.totalorder %s1462_s20, %s1455_s2 }
  0x82   : > { %p1459_p0 = pneg %p1458_p12  ;;  %p1465_p6 = por %p1464_p10, %p1463_p4 }
  0x84   : > { %p1466_p9 = pnand %p1465_p6, %p1459_p0 }
  0x86   : > { %1469 = shalt.err (!%p1466_p9)
}
  0x87   : > { %s1665_s4 = smov 64   ;;  %s1666_s12 = smov 4  }
  0x88   : > { %1254 = dma.hbm_to_vmem [thread:$0]  (!%p2274_p1), %s1936_s11, 256, %s1938_s29, %s395_s9, %s1665_s4, %s1665_s4, %s1666_s12  }
  0x89   : > { %s2276_s5 = sld [smem:[#allocation31_spill]]  ;;  %s435_s27 = scalar_lea.vmem [#allocation7], %s1835_s13 }
  0x8a   : > { %s442_s15 = sshll.u32 %s435_s27, 4  ;;  %s1179_s20 = sshll.u32 %s1835_s13, 2  ;;  %s443_s15 = int_to_ptr.vmem [resolvable:$true] %s442_s15 }
  0x8f   : > { %s1968_s2 = scalar_lea.hbm %s2276_s5, %s1849_s26  ;;  %s1475_s29 = scalar_lea.hbm %s2276_s5, 32 }
  0x90   : > { %s1470_s3 = scalar_lea.hbm %s1968_s2, 16  ;;  %p1476_p5 = scmp.lt.u32.totalorder %s1968_s2, %s2276_s5 }
  0x91   : > { %p1471_p2 = scmp.ne.s32.totalorder %s1968_s2, %s1470_s3  ;;  %p1477_p3 = scmp.lt.u32.totalorder %s1475_s29, %s1470_s3 }
  0x92   : > { %p1479_p12 = scmp.lt.u32.totalorder %s1470_s3, %s1968_s2 }
  0x93   : > { %p1473_p11 = pnand %p1471_p2, %p1870_p7  ;;  %p1478_p8 = por %p1477_p3, %p1476_p5 }
  0x95   : > { %p1474_p13 = pneg %p1473_p11  ;;  %p1480_p0 = por %p1479_p12, %p1478_p8 }
  0x97   : > { %p1481_p4 = pnand %p1480_p0, %p1474_p13 }
  0x99   : > { %1484 = shalt.err (!%p1481_p4)
}
  0x9a   : > { %s1485_s4 = scalar_lea.vmem %s443_s15, 16  ;;  %s1667_s12 = smov [#allocation7]  }
  0x9b   : > { %p1486_p10 = scmp.ne.s32.totalorder %s443_s15, %s1485_s4  ;;  %s1490_s8 = sshll.u32 %s1667_s12, 4  ;;  %s1491_s8 = int_to_ptr.vmem [resolvable:$false] %s1490_s8 }
  0x9c   : > { %s1492_s6 = scalar_lea.vmem %s1491_s8, 32  ;;  %p1493_p2 = scmp.lt.s32.totalorder %s443_s15, %s1491_s8 }
  0x9d   : > { %p1488_p6 = pnand %p1486_p10, %p1870_p7  ;;  %p1494_p11 = scmp.lt.s32.totalorder %s1492_s6, %s1485_s4 }
  0x9f   : > { %p1489_p9 = pneg %p1488_p6  ;;  %p1495_p1 = por %p1494_p11, %p1493_p2 }
  0xa1   : > { %p1496_p3 = pnand %p1495_p1, %p1489_p9 }
  0xa3   : > { %1499 = shalt.err (!%p1496_p3)
}
  0xa4   : > { %p2277_p5 = scmp.ne.s32.totalorder %s2265_s10, 0  ;;  %s1180_s3 = sshll.u32 %s1652_s25, 6 }
  0xa5   : > { %s2278_s7 = sld [smem:[#allocation33_spill]]  ;;  %s470_s29 = scalar_lea.vmem [#allocation10], %s1179_s20 }
  0xa6   : > { %1260 = dma.hbm_to_vmem [thread:$0]  (!%p2277_p5), %s1968_s2, 16, %s443_s15, %s1864_s19  }
  0xa7   : > { %s477_s9 = sshll.u32 %s470_s29, 4  ;;  %s478_s9 = int_to_ptr.vmem [resolvable:$true] %s477_s9 }
  0xab   : > { %s1994_s11 = scalar_lea.hbm %s2278_s7, %s1180_s3  ;;  %s1505_s15 = scalar_lea.hbm %s2278_s7, 128 }
  0xac   : > { %s1500_s26 = scalar_lea.hbm %s1994_s11, 64  ;;  %p1506_p12 = scmp.lt.u32.totalorder %s1994_s11, %s2278_s7 }
  0xad   : > { %p1501_p1 = scmp.ne.s32.totalorder %s1994_s11, %s1500_s26  ;;  %p1507_p0 = scmp.lt.u32.totalorder %s1505_s15, %s1500_s26 }
  0xae   : > { %p1509_p10 = scmp.lt.u32.totalorder %s1500_s26, %s1994_s11 }
  0xaf   : > { %p1503_p13 = pnand %p1501_p1, %p1870_p7  ;;  %p1508_p4 = por %p1507_p0, %p1506_p12 }
  0xb1   : > { %p1504_p8 = pneg %p1503_p13  ;;  %p1510_p6 = por %p1509_p10, %p1508_p4 }
  0xb3   : > { %p1511_p9 = pnand %p1510_p6, %p1504_p8 }
  0xb5   : > { %1514 = shalt.err (!%p1511_p9)
}
  0xb6   : > { %s1515_s13 = scalar_lea.vmem %s478_s9, 64  ;;  %s1668_s20 = smov [#allocation10]  }
  0xb7   : > { %p1516_p2 = scmp.ne.s32.totalorder %s478_s9, %s1515_s13  ;;  %s1520_s8 = sshll.u32 %s1668_s20, 4  ;;  %s1521_s8 = int_to_ptr.vmem [resolvable:$false] %s1520_s8 }
  0xb8   : > { %s1522_s6 = scalar_lea.vmem %s1521_s8, 128  ;;  %p1523_p1 = scmp.lt.s32.totalorder %s478_s9, %s1521_s8 }
  0xb9   : > { %p1518_p11 = pnand %p1516_p2, %p1870_p7  ;;  %p1524_p13 = scmp.lt.s32.totalorder %s1522_s6, %s1515_s13 }
  0xbb   : > { %p1519_p3 = pneg %p1518_p11  ;;  %p1525_p5 = por %p1524_p13, %p1523_p1 }
  0xbd   : > { %p1526_p0 = pnand %p1525_p5, %p1519_p3 }
  0xbf   : > { %1529 = shalt.err (!%p1526_p0)
}
  0xc0   : > { %p2279_p12 = scmp.ne.s32.totalorder %s2265_s10, 0  ;;  %p2280_p8 = scmp.ne.s32.totalorder %s2271_s17, 0 }
  0xc1   : > { %s2019_s16 = sand.u32 (!%p2280_p8), 1, %s1636_s21   ;;  %p2281_p7 = scmp.ne.s32.totalorder (!%p2280_p8), %s2259_s30, 0 }
  0xc2   : > { %1266 = dma.hbm_to_vmem [thread:$0]  (!%p2279_p12), %s1994_s11, 64, %s478_s9, %s1911_s22  }
  0xc3   : > { %507 = sbr.rel (%p2280_p8) target bundleno = 1894 (0x766), region = 64  ;;  %s1182_s3 = sshll.u32 (!%p2280_p8), %s2019_s16, 4 }
  0xc4   : > { %s510_s14 = scalar_lea.sflag (!%p2280_p8), [#allocation3], %s2019_s16  ;;  %s2023_s27 = scalar_lea.vmem (!%p2280_p8), [#allocation2], %s1182_s3 }
  0xca   : > { %1603 = dma.done.wait (%p2281_p7), %s510_s14, 256  }
  0xcb   : > { %1605 = vsyncadd (%p2281_p7), %s510_s14, 4294967040  ;;  %s518_s10 = sand.u32 1, %s1789_s28  }
  0xcc   : > { %s519_s17 = scalar_lea.sflag [#allocation6], %s518_s10 }
  0xcd   : > { %1607 = dma.done.wait (%p2281_p7), %s519_s17, 32  }
  0xce   : > { %1609 = vsyncadd (%p2281_p7), %s519_s17, 4294967264  ;;  %s535_s29 = scalar_lea.sflag [#allocation9], %s518_s10 }
  0xcf   : > { %1611 = dma.done.wait (%p2281_p7), %s535_s29, 80  }
  0xd0   : > { %1613 = vsyncadd (%p2281_p7), %s535_s29, 4294967216  ;;  %s1183_s28 = sshll.u32 %s2019_s16, 2  ;;  %s2237_s26 = sand.u32 1, %s1624_s18  }
  0xd1   : > { %s1184_s19 = sshll.u32 %s2237_s26, 3  ;;  %p624_p5 = scmp.lt.s32.totalorder %s1648_s24, 1 }
  0xd2   : > { %p628_p4 = scmp.lt.s32.totalorder %s1644_s23, 1  ;;  %s2282_s10 = sld [smem:[#allocation28_spill]] }
  0xd3   : > { %s625_s2 = scalar_select %p624_p5, %s1648_s24, 1 }
  0xd4   : > { %s2049_s15 = scalar_select %p628_p4, %s1644_s23, 1 }
  0xd5   : > { %s1185_s30 = sshll.u32 %s625_s2, 3  ;;  %s2283_s11 = sld [smem:[#allocation34_spill]] }
  0xd6   : > { %s627_s13 = scalar_lea.vmem %s2208_s0, %s1185_s30  ;;  %s1186_s29 = sshll.u32 %s2049_s15, 3 }
  0xd7   : > { %s1208_s5 = sshll.u32 %s2049_s15, 4  ;;  %s2284_s25 = sld [smem:[#allocation35_spill]] }
  0xd8   : > { %s633_s17 = scalar_lea.vmem %s2282_s10, %s2049_s15  ;;  %s2285_s20 = sld [smem:[#allocation36_spill]] }
  0xd9   : > { %s2078_s6 = scalar_lea.vmem [#allocation10], %s1183_s28  ;;  %s2080_s3 = scalar_lea.vmem [#allocation11], %s1184_s19 }
  0xda   : > { %p1189_p10 = scmp.ne.s32.totalorder %s1644_s23, 0 }
  0xdb   : > { %s2066_s22 = scalar_lea.vmem %s2283_s11, %s1186_s29  ;;  %v651_v0 = vld [vmem:[%s627_s13] sm:$0xff] (!%p1189_p10)  ;;  %vm652_vm0 = vcmask (!%p1189_p10), 261120  }
  0xdc   : > { %650 = sbr.rel (%p1189_p10) target bundleno = 227 (0xe3), region = 88  ;;  %653 = vst.msk [vmem:[%s2080_s3] sm:$0xff] (!%p1189_p10), %vm652_vm0, %v651_v0 }
  0xdd   : > { %s2072_s4 = scalar_lea.vmem %s2284_s25, %s1208_s5 }
  0xde   : > { %s645_s8 = scalar_lea.vmem %s2285_s20, %s2049_s15 }
  0xe3 PF: > { %v2085_v1 = vld [vmem:[%s2080_s3] sm:$0xff]  ;;  %vm657_vm1 = vcmask 261120   ;;  %v1669_v9 = vmov 0.0   ;;  %vm1670_vm2 = vmmov 0   ;;  %s2286_s23 = scalar_lea.vmem %s2209_s1, %s2049_s15  ;;  %v1191_v17 = vld [vmem:[%s633_s17] ss:$0 sm:$0xff] }
  0xe4   : > { %v658_v2 = vsel %vm657_vm1, %v2085_v1, 0.0  ;;  %v1370_v8 = vld [vmem:[%s2023_s27] sm:$0xff]   ;;  %1217 = vmatprep.subr.bf16.mxu0 %v1669_v9  ;;  %1221 = vmatprep.mubr.msk.bf16.mxu0 %vm1670_vm2, %v1669_v9  ;;  %v1371_v10 = vld [vmem:[%s2023_s27 + $0x8] sm:$0xff]   ;;  %s2288_s9 = scalar_lea.vmem [#allocation5], %s2019_s16  ;;  %s1671_s28 = smov 96   ;;  %v1673_v53 = vmov 0  }
  0xe5   : > { %659 = vadd.xlane.f32.xlu0 %v658_v2  ;;  %1218 = vmatpush3.bf16.msra.mxu0 %v1370_v8  ;;  %v1190_v15 = vld [vmem:[%s2286_s23] ss:$0 sm:$0xff]  ;;  %s2289_s26 = scalar_lea.vmem [#allocation7], %s2019_s16  ;;  %s1672_s19 = smov 32   ;;  %vm819_vm3 = vcmask 1043456   ;;  %vm815_vm4 = vcmask 64512  }
  0xe6   : > { %1225 = vmatprep.subr.bf16.mxu1 %v1669_v9  ;;  %1219 = vmatprep.subr.bf16.mxu0 %v1669_v9  ;;  %v1192_v21 = vld [vmem:[%s2288_s9] ss:$0 sm:$0xff]  ;;  %s2290_s13 = scalar_lea.vmem [#allocation8], %s2019_s16  ;;  %v805_v60 = vld [vmem:[%s2078_s6] sm:$0xf]  ;;  %s2292_s14 = sld [smem:[#allocation26_spill]] }
  0xe7   : > { %1227 = vmatprep.mubr.msk.bf16.mxu1 %vm1670_vm2, %v1669_v9  ;;  %v1196_v38 = vld [vmem:[%s2289_s26] ss:$0 sm:$0xff]  ;;  %1368 = vset.pattern.permute.xlu1 %v1673_v53  ;;  %v1373_v62 = vld [vmem:[%s2072_s4 + $0x8] sm:$0xff]   ;;  %s1204_s10 = sshll.u32 %s1648_s24, 7  ;;  %s948_s17 = sshll.u32 %s2080_s3, 4  ;;  %s2144_s17 = int_to_ptr.vmem [resolvable:$true] %s948_s17 }
  0xe8   : > { %v1197_v39 = vld [vmem:[%s2290_s13] ss:$0 sm:$0xff]  ;;  %1369 = vset.pattern.permute.xlu0 %v1673_v53  ;;  %s2294_s24 = sand.u32 1, %s1624_s18   ;;  %s1530_s12 = scalar_lea.vmem %s2144_s17, 128 }
  0xe9   : > { %1220 = vmatpush3.bf16.msra.mxu0 %v1371_v10  ;;  %v806_v51 = vld [vmem:[%s2066_s22] sm:$0xff]  ;;  %s935_s15 = scalar_lea.sflag [#allocation4], %s2294_s24  ;;  %p1531_p6 = scmp.ne.s32.totalorder %s2144_s17, %s1530_s12 }
  0xea   : > { %v1372_v61 = vld [vmem:[%s2072_s4] sm:$0xff]   ;;  %s2293_s4 = sld [smem:[#allocation37_spill]]  ;;  %s1674_s20 = smov [#allocation11]  }
  0xec   : > { %p2295_p9 = scmp.ne.s32.totalorder %s2292_s14, 0 }
  0xee   : > { %p1532_p2 = pnand %p1531_p6, %p2295_p9 }
  0xf0   : > { %s2142_s30 = scalar_lea.hbm %s2293_s4, %s1204_s10  ;;  %p1533_p11 = pneg %p1532_p2 }
 0x172   : > { %v660_v3 = vpop.xlane.xlu0 %659 }
 0x173   : > { %v662_v4 = vmul.f32 0.03125, %v660_v3 }
 0x175   : > { %v663_v5 = vsub.f32 %v2085_v1, %v662_v4 }
 0x177   : > { %v664_v6 = vmul.f32 %v663_v5, %v663_v5 }
 0x179   : > { %v665_v7 = vsel %vm657_vm1, %v664_v6, 0.0 }
 0x17a   : > { %666 = vadd.xlane.f32.xlu0 %v665_v7 }
 0x207   : > { %v667_v11 = vpop.xlane.xlu0 %666 }
 0x208   : > { %v668_v12 = vmul.f32 0.03125, %v667_v11 }
 0x20a   : > { %v669_v13 = vadd.f32 1e-05, %v668_v12 }
 0x20c   : > { %1374 = vrsqrt.f32 %v669_v13 }
 0x216   : > { %v1375_v14 = vpop.eup %1374 }
 0x217   : > { %v671_v16 = vmul.f32 %v1375_v14, %v663_v5 }
 0x219   : > { %v678_v18 = vmul.f32 %v1190_v15, %v671_v16 }
 0x21b   : > { %v685_v19 = vadd.f32 %v1191_v17, %v678_v18 }
 0x21d   : > { %v686_v20 = vpack.c.bf16 %v685_v19, %v685_v19 }
 0x21f   : > { %1222 = vmatmul.mubr.msk.bf16.vlgmr.msra.gmra.mrb[0].mxu0 %vm657_vm1, %v686_v20 }
 0x2f2   : > { %v747_v22 = vpop.f32.mrb[0].mxu0 }
 0x2f3   : > { %v748_v23 = vadd.f32 %v1192_v21, %v747_v22  ;;  %v1223_v24 = vpop.f32.mrb[1].mxu0 }
 0x2f4   : > { %v750_v25 = vpop.f32.mrb[2].mxu0 }
 0x2f5   : > { %v754_v26 = vmul.f32 0.044715, %v748_v23  ;;  %v1224_v27 = vpop.f32.mrb[3].mxu0  ;;  %v753_v33 = vmul.f32 0.5, %v748_v23 }
 0x2f7   : > { %v755_v28 = vmul.f32 %v754_v26, %v748_v23 }
 0x2f9   : > { %v756_v29 = vmul.f32 %v755_v28, %v748_v23 }
 0x2fb   : > { %v757_v30 = vadd.f32 %v756_v29, %v748_v23 }
 0x2fd   : > { %v758_v31 = vmul.f32 0.7978846, %v757_v30 }
 0x2ff   : > { %1376 = vtanh.f32 %v758_v31 }
 0x309   : > { %v1377_v32 = vpop.eup %1376 }
 0x30a   : > { %v760_v34 = vadd.f32 1.0, %v1377_v32 }
 0x30c   : > { %v761_v35 = vmul.f32 %v760_v34, %v753_v33 }
 0x30e   : > { %766 = vrot.lane.b32.xlu1 %v761_v35, %s1671_s28  ;;  %v762_v63 = vpack.c.bf16 %v761_v35, %v761_v35 }
 0x310   : > { %v863_v4 = vunpack.c.l.bf16 %v762_v63 }
 0x380   : > { %v767_v36 = vpop.permute.xlu1 %766 }
 0x381   : > { %v769_v37 = vsel %vm657_vm1, %v767_v36, 0.0 }
 0x382   : > { %770 = vadd.xlane.f32.xlu1 %v769_v37 }
 0x393   : > { %791 = vrot.lane.b32.xlu1 %v1196_v38, %s1672_s19 }
 0x397   : > { %800 = vrot.lane.b32.xlu1 %v1197_v39, %s1672_s19 }
 0x39b   : > { %809 = vperm.xlu1 %1368, %v806_v51  }
 0x40f   : > { %v771_v40 = vpop.xlane.xlu1 %770 }
 0x410   : > { %v772_v41 = vmul.f32 0.03125, %v771_v40 }
 0x412   : > { %v773_v42 = vsub.f32 %v761_v35, %v772_v41 }
 0x413   : > { %v792_v49 = vpop.permute.xlu1 %791 }
 0x414   : > { %v774_v43 = vmul.f32 %v773_v42, %v773_v42 }
 0x416   : > { %776 = vrot.lane.b32.xlu0 %v774_v43, %s1671_s28 }
 0x417   : > { %v801_v54 = vpop.permute.xlu1 %800 }
 0x41b   : > { %v810_v0 = vpop.permute.xlu1 %809 }
 0x488   : > { %v777_v44 = vpop.permute.xlu0 %776 }
 0x489   : > { %v779_v45 = vsel %vm657_vm1, %v777_v44, 0.0 }
 0x48a   : > { %780 = vadd.xlane.f32.xlu0 %v779_v45 }
 0x517   : > { %v781_v46 = vpop.xlane.xlu0 %780 }
 0x518   : > { %v782_v47 = vmul.f32 0.03125, %v781_v46 }
 0x51a   : > { %v783_v48 = vadd.f32 1e-05, %v782_v47 }
 0x51c   : > { %1378 = vrsqrt.f32 %v783_v48 }
 0x526   : > { %v1379_v50 = vpop.eup %1378 }
 0x527   : > { %v785_v52 = vmul.f32 %v1379_v50, %v773_v42 }
 0x529   : > { %v794_v55 = vmul.f32 %v792_v49, %v785_v52 }
 0x52b   : > { %v803_v56 = vadd.f32 %v801_v54, %v794_v55 }
 0x52d   : > { %v804_v57 = vpack.c.bf16 %v803_v56, %v803_v56 }
 0x52f   : > { %813 = vrot.lane.b32.xlu0 %v804_v57, %s1671_s28 }
 0x5a1   : > { %v814_v58 = vpop.permute.xlu0 %813 }
 0x5a2   : > { %v821_v59 = vsel %vm819_vm3, %v814_v58, 0 }
 0x5a3   : > { %1226 = vmatpush3.bf16.msra.mxu1 %v821_v59 }
 0x5a4   : > { %1231 = vmatprep.subr.bf16.mxu1 %v1669_v9 }
 0x5a6   : > { %1228 = vmatmul.mubr.msk.bf16.vlgmr.msra.gmra.mrb[0].mxu1 %vm815_vm4, %v805_v60 }
 0x5a7   : > { %1232 = vmatpush3.bf16.msra.mxu1 %v1372_v61  ;;  %1235 = vmatprep.mubr.msk.bf16.mxu1 %vm1670_vm2, %v1669_v9 }
 0x5a8   : > { %1233 = vmatprep.subr.bf16.mxu1 %v1669_v9  ;;  %v1199_v9 = vld [vmem:[%s645_s8] ss:$0 sm:$0xff]  ;;  %s1534_s8 = sshll.u32 %s1674_s20, 4  ;;  %s1535_s8 = int_to_ptr.vmem [resolvable:$false] %s1534_s8 }
 0x5a9   : > { %s1536_s5 = scalar_lea.vmem %s1535_s8, 256  ;;  %p1537_p3 = scmp.lt.s32.totalorder %s2144_s17, %s1535_s8 }
 0x5aa   : > { %p1538_p1 = scmp.lt.s32.totalorder %s1536_s5, %s1530_s12 }
 0x5ab   : > { %1234 = vmatpush3.bf16.msra.mxu1 %v1373_v62 }
 0x5ac   : > { %p1539_p13 = por %p1538_p1, %p1537_p3 }
 0x5ae   : > { %p1540_p0 = pnand %p1539_p13, %p1533_p11 }
 0x679   : > { %v857_v2 = vpop.f32.mrb[0].mxu1 }
 0x67a   : > { %v858_v3 = vadd.f32 %v857_v2, %v810_v0  ;;  %v1229_v5 = vpop.f32.mrb[1].mxu1 }
 0x67b   : > { %v860_v6 = vpop.f32.mrb[2].mxu1 }
 0x67c   : > { %v864_v7 = vmul.f32 %v863_v4, %v858_v3  ;;  %v1230_v8 = vpop.f32.mrb[3].mxu1 }
 0x67e   : > { %v865_v10 = vpack.c.bf16 %v864_v7, %v864_v7 }
 0x680   : > { %1236 = vmatmul.mubr.msk.bf16.vlgmr.msra.gmra.mrb[4].mxu1 %vm657_vm1, %v865_v10 }
 0x753   : > { %v926_v11 = vpop.f32.mrb[4].mxu1 }
 0x754   : > { %v927_v12 = vadd.f32 %v1199_v9, %v926_v11  ;;  %v1237_v13 = vpop.f32.mrb[5].mxu1 }
 0x755   : > { %v929_v14 = vpop.f32.mrb[6].mxu1 }
 0x756   : > { %v932_v15 = vadd.f32 %v927_v12, %v2085_v1  ;;  %v1238_v16 = vpop.f32.mrb[7].mxu1 }
 0x758   : > { %933 = vst.msk [vmem:[%s2080_s3] sm:$0xff] %vm657_vm1, %v932_v15 }
 0x759   : > { %1543 = shalt.err (!%p1540_p0)
}
 0x75a   : > { %s1544_s3 = scalar_lea.hbm %s2142_s30, 128  ;;  %s1548_s25 = scalar_lea.hbm %s2293_s4, 256 }
 0x75b   : > { %p1545_p12 = scmp.ne.s32.totalorder %s2142_s30, %s1544_s3  ;;  %p1549_p5 = scmp.lt.u32.totalorder %s2142_s30, %s2293_s4 }
 0x75c   : > { %p1550_p4 = scmp.lt.u32.totalorder %s1548_s25, %s1544_s3  ;;  %p1552_p6 = scmp.lt.u32.totalorder %s1544_s3, %s2142_s30 }
 0x75d   : > { %p1546_p8 = pnand %p1545_p12, %p2295_p9 }
 0x75e   : > { %p1551_p10 = por %p1550_p4, %p1549_p5 }
 0x75f   : > { %p1547_p7 = pneg %p1546_p8 }
 0x760   : > { %p1553_p2 = por %p1552_p6, %p1551_p10 }
 0x762   : > { %p1554_p11 = pnand %p1553_p2, %p1547_p7 }
 0x764   : > { %1557 = shalt.err (!%p1554_p11)
}
 0x765   : > { %1249 = dma.vmem_to_hbm [thread:$0]  (%p2295_p9), %s2144_s17, 128, %s2142_s30, %s935_s15  }
 0x766 PF: > { %s2296_s9 = sld [smem:[#allocation21_spill]]  ;;  %s2297_s28 = sld [smem:[#allocation16_spill]] }
 0x767   : > { %s2298_s26 = sld [smem:[#allocation27_spill]] }
 0x76c   : > { %p1272_p3 = scmp.ge.s32.totalorder %s2296_s9, 2  ;;  %s960_s19 = sand.u32 1, %s2297_s28  }
 0x76d   : > { %p2299_p1 = scmp.ne.s32.totalorder %s2298_s26, 0  ;;  %s961_s13 = scalar_lea.sflag [#allocation4], %s960_s19 }
 0x76f   : > { %p1268_p13 = pnand %p1272_p3, %p2299_p1 }
 0x771   : > { %1615 = dma.done.wait (!%p1268_p13), %s961_s13, 128  }
 0x772   : > { %1617 = vsyncadd (!%p1268_p13), %s961_s13, 4294967168  ;;  %s33_s27 = sadd.s32 1, %s2296_s9   ;;  %s2300_s16 = sld [smem:[#allocation17_spill]] }
 0x773   : > { %p30_p0 = scmp.ge.s32.totalorder %s33_s27, 6   ;;  %s2301_s19 = sld [smem:[#allocation25_spill]] }
 0x774   : > { %s2302_s22 = sld [smem:[#allocation18_spill]]  ;;  %s2303_s6 = sld [smem:[#allocation24_spill]] }
 0x775   : > { %s2304_s23 = sld [smem:[#allocation19_spill]]  ;;  %s2305_s24 = sld [smem:[#allocation20_spill]] }
 0x776   : > { %s2306_s25 = sld [smem:[#allocation22_spill]]  ;;  %s2307_s26 = sld [smem:[#allocation23_spill]] }
 0x777   : > { %s2308_s17 = smov %s1624_s18  ;;  %s2310_s20 = smov %s1636_s21 }
 0x778   : > { %s2309_s18 = smov %s2300_s16  ;;  %32 = sbr.rel (!%p30_p0) target bundleno = 24 (0x18), region = 179 }
 0x77a   : > { %s2311_s21 = smov %s2302_s22  ;;  %s2312_s22 = smov %s2303_s6 }
 0x77f   :  { %966 = vsyncpa [#allocation3], 1 }
 0x780   :  { %968 = vsyncpa [#allocation3 + $0x1], 1 }
 0x781   :  { %969 = vsyncpa [#allocation6], 1 }
 0x782   :  { %971 = vsyncpa [#allocation6 + $0x1], 1 }
 0x783   :  { %972 = vsyncpa [#allocation9], 1 }
 0x784   :  { %974 = vsyncpa [#allocation9 + $0x1], 1 }
 0x785   :  { %975 = vsyncpa [#allocation4], 1 }
 0x786   :  { %977 = vsyncpa [#allocation4 + $0x1], 1 }

</bundles_post_ra>
